<compile_context>
chip_gen: v7x
topology: tpu7x:2x2x1
jax: 0.10.0
libtpu: 0.0.40
codegen_flags: <defaults>
</compile_context>

<pallas_src>
import functools

import jax
import jax.numpy as jnp
import numpy as np
from jax import lax
from jax.experimental import pallas as pl
from jax.experimental.pallas import tpu as pltpu

_MASK = -1e30  # finite "minus infinity" for padded source positions


def _round_up(x, m):
    return ((x + m - 1) // m) * m


def _attention_kernel(dec_ref, enc_ref, w_ref, ctx_ref, attn_ref,
                      proj_ref, m_ref, l_ref, acc_ref, e_ref,
                      *, s_real, s_padded, block_s, ns):
    # dec_ref  : (TB, H)       decoder hidden states for this batch tile
    # enc_ref  : (TB, TS, H)   encoder chunk (streamed over the seq grid axis)
    # w_ref    : (H, H)        nn.Linear weight (y = x @ W^T)
    # ctx_ref  : (TB, H)       context (resident across seq axis, written last)
    # attn_ref : (TB, S_p)     attention weights (resident, lane-dense)
    # scratch  : proj (TB,H), m (TB,1), l (TB,1), acc (TB,H), e (ns,TB,TS)
    s = pl.program_id(1)

    # ---- per-batch-tile init (first sequence chunk) --------------------
    @pl.when(s == 0)
    def _():
        # proj = dec @ W^T : contract dec dim 1 against w dim 1 directly, so no
        # transposed weight is materialized and the MXU sees M = TB rows.
        proj_ref[...] = lax.dot_general(
            dec_ref[...], w_ref[...], (((1,), (1,)), ((), ())),
            preferred_element_type=jnp.float32)
        m_ref[...] = jnp.full_like(m_ref, -jnp.inf)
        l_ref[...] = jnp.zeros_like(l_ref)
        acc_ref[...] = jnp.zeros_like(acc_ref)

    # ---- this sequence chunk (bounded working set) ----------------------
    # f32 chunk copy (no-op for f32 inputs); for bf16 inputs on v6e/v7x this
    # could stay bf16 for the multiplies with f32 accumulation.
    enc = enc_ref[...].astype(jnp.float32)              # (TB, TS, H)
    proj = proj_ref[...]                                 # (TB, H)

    # energy[b, t] = <enc[b, t, :], proj[b, :]>   (VPU mul + lane reduce over H)
    energy = jnp.sum(enc * proj[:, None, :], axis=2)     # (TB, TS) f32

    if s_padded > s_real:  # static: only mask when the seq axis was padded
        pos = s * block_s + lax.broadcasted_iota(jnp.int32, energy.shape, 1)
        energy = jnp.where(pos < s_real, energy, _MASK)

    # Stash raw (masked) energies; normalized in place on the last chunk.
    e_ref[s] = energy

    # ---- online softmax update ------------------------------------------
    m_prev = m_ref[...]
    m_new = jnp.maximum(m_prev, jnp.max(energy, axis=-1, keepdims=True))
    alpha = jnp.exp(m_prev - m_new)
    p = jnp.exp(energy - m_new)                           # masked entries -> 0
    l_ref[...] = alpha * l_ref[...] + jnp.sum(p, axis=-1, keepdims=True)
    # Context accumulation on the VPU/XLU.  The MXU is nearly idle here, so
    # this could move to a batched dot_general if profiling shows VALU/XLU
    # saturation; the op is HBM-bound, so we keep the simpler form.
    acc_ref[...] = alpha * acc_ref[...] + jnp.sum(p[:, :, None] * enc, axis=1)
    m_ref[...] = m_new

    # ---- finalize: normalize and emit the resident outputs --------------
    @pl.when(s == ns - 1)
    def _():
        inv_l = pl.reciprocal(l_ref[...], approx=False)   # EUP, frees VALU slot
        ctx_ref[...] = (acc_ref[...] * inv_l).astype(ctx_ref.dtype)
        m_fin = m_ref[...]
        for j in range(ns):                               # static unrolled slices
            attn_ref[:, j * block_s:(j + 1) * block_s] = (
                jnp.exp(e_ref[j] - m_fin) * inv_l)


def attention_forward(decoder_outputs, encoder_outputs, w, *,
                      block_b=None, block_s=None):
    """decoder_outputs: (B, H), encoder_outputs: (B, S, H), w: (H, H).

    Returns (context (B, 1, H), attention (B, S, 1)) matching the PyTorch
    'general'/'global' forward; attention weights are float32."""
    B, S, H = encoder_outputs.shape
    assert decoder_outputs.shape == (B, H)
    assert w.shape == (H, H)

    # ---------------- VMEM-aware tile selection --------------------------
    try:
        vmem_cap = int(pltpu.get_tpu_info().vmem_capacity_bytes)
    except Exception:
        vmem_cap = 64 * 1024 * 1024          # conservative (v7x per-core VMEM)
    budget = int(0.65 * vmem_cap)

    enc_isz = encoder_outputs.dtype.itemsize
    dec_isz = decoder_outputs.dtype.itemsize
    w_isz = w.dtype.itemsize

    def footprint(bb, bs, sp):
        ns = sp // bs
        return (2 * bb * bs * H * enc_isz        # double-buffered encoder chunk
                + 2 * bb * bs * H * 4            # in-kernel f32 chunk working set
                + ns * bb * bs * 4               # raw-energy scratch (= bb*sp)
                + 2 * bb * sp * 4                # resident attn output block
                + 2 * bb * H * dec_isz           # decoder block
                + 2 * bb * H * enc_isz           # ctx output block
                + 2 * H * H * w_isz              # weight block
                + bb * (2 * H + 2 * 128) * 4)    # proj/acc/m/l scratch

    if block_b is None:
        auto_bb = True
        block_b = min(128, _round_up(B, 8))
        if B >= 16:
            # keep >= 2 batch tiles so both v7x TensorCores get work
            block_b = min(block_b, _round_up(-(-B // 2), 8))
    else:
        auto_bb = False
        block_b = max(8, _round_up(block_b, 8))

    while True:
        if block_s is not None:
            bs = block_s
        else:
            s_full = _round_up(S, 8)
            if footprint(block_b, s_full, s_full) <= budget:
                bs = s_full                       # whole sequence per grid step
            else:
                bs = _round_up(S, 128)            # lane-dense 128-multiple chunks
                while bs > 128 and footprint(block_b, bs, _round_up(S, bs)) > budget:
                    bs -= 128
        S_p = _round_up(S, bs)
        if (not auto_bb) or block_b <= 8 or footprint(block_b, bs, S_p) <= budget:
            block_s = bs
            break
        block_b = max(8, _round_up(block_b // 2, 8))   # shrink batch tile, retry

    ns = S_p // block_s
    nb = -(-B // block_b)
    Bp = nb * block_b

    est = footprint(block_b, block_s, S_p)
    vmem_limit = int(min(int(0.85 * vmem_cap),
                         max(32 * 1024 * 1024, int(1.25 * est))))
    vmem_limit = max(vmem_limit, est)

    # ---------------- padding (sliced off after the call) ----------------
    if Bp != B or S_p != S:
        decoder_outputs = jnp.pad(decoder_outputs, ((0, Bp - B), (0, 0)))
        encoder_outputs = jnp.pad(encoder_outputs,
                                  ((0, Bp - B), (0, S_p - S), (0, 0)))

    kernel = functools.partial(_attention_kernel,
                               s_real=S, s_padded=S_p,
                               block_s=block_s, ns=ns)

    ctx, attn = pl.pallas_call(
        kernel,
        out_shape=(
            jax.ShapeDtypeStruct((Bp, H), encoder_outputs.dtype),
            jax.ShapeDtypeStruct((Bp, S_p), jnp.float32),
        ),
        grid_spec=pltpu.PrefetchScalarGridSpec(
            num_scalar_prefetch=0,
            grid=(nb, ns),
            in_specs=[
                pl.BlockSpec((block_b, H), lambda b, s: (b, 0)),
                pl.BlockSpec((block_b, block_s, H), lambda b, s: (b, s, 0)),
                pl.BlockSpec((H, H), lambda b, s: (0, 0)),
            ],
            out_specs=[
                pl.BlockSpec((block_b, H), lambda b, s: (b, 0)),
                pl.BlockSpec((block_b, S_p), lambda b, s: (b, 0)),
            ],
            scratch_shapes=[
                pltpu.VMEM((block_b, H), jnp.float32),              # proj
                pltpu.VMEM((block_b, 1), jnp.float32),              # running max
                pltpu.VMEM((block_b, 1), jnp.float32),              # running denom
                pltpu.VMEM((block_b, H), jnp.float32),              # ctx accumulator
                pltpu.VMEM((ns, block_b, block_s), jnp.float32),    # raw energies
            ],
        ),
        compiler_params=pltpu.CompilerParams(
            dimension_semantics=("parallel", "arbitrary"),
            vmem_limit_bytes=vmem_limit),
    )(decoder_outputs, encoder_outputs, w)

    # Glue reshapes/slices (outside the kernel) to the PyTorch output shapes.
    ctx = ctx[:B].reshape(B, 1, H)
    attn = attn[:B, :S].reshape(B, S, 1)
    return ctx, attn


def attention_reference(decoder_outputs, encoder_outputs, w):
    """Pure-JAX reference matching the PyTorch 'general'/'global' path."""
    proj = decoder_outputs @ w.T                                          # (B, H)
    energy = jnp.einsum("bsh,bh->bs", encoder_outputs, proj)[..., None]   # (B, S, 1)
    attn = jax.nn.softmax(energy, axis=1)                                 # (B, S, 1)
    ctx = jnp.einsum("bs,bsh->bh", attn[..., 0], encoder_outputs)[:, None, :]
    return ctx, attn


if __name__ == "__main__":
    # Full-precision f32 matmuls on both the kernel and the reference side so
    # the comparison is apples-to-apples.
    jax.config.update("jax_default_matmul_precision", "highest")

    key = jax.random.PRNGKey(0)
    k_dec, k_enc, k_w, k_rest = jax.random.split(key, 4)

    # ---- small shapes consistent with the module: B=2, S=8, H=32 --------
    B, S, H = 2, 8, 32
    decoder_outputs = jax.random.normal(k_dec, (B, H), dtype=jnp.float32)
    encoder_outputs = jax.random.normal(k_enc, (B, S, H), dtype=jnp.float32)
    bound = 1.0 / np.sqrt(H)
    w = jax.random.uniform(k_w, (H, H), dtype=jnp.float32,
                           minval=-bound, maxval=bound)

    ctx, attn = attention_forward(decoder_outputs, encoder_outputs, w)
    ctx = jax.block_until_ready(ctx)
    attn = jax.block_until_ready(attn)

    ctx_ref, attn_ref = attention_reference(decoder_outputs, encoder_outputs, w)
    np.testing.assert_allclose(np.asarray(ctx), np.asarray(ctx_ref),
                               rtol=1e-5, atol=1e-5)
    np.testing.assert_allclose(np.asarray(attn), np.asarray(attn_ref),
                               rtol=1e-5, atol=1e-5)
    assert ctx.shape == (B, 1, H) and attn.shape == (B, S, 1)

    # ---- exercise batch + sequence tiling / padding / online softmax ----
    B2, S2, H2 = 20, 300, 128
    k_dec2, k_enc2, k_w2 = jax.random.split(k_rest, 3)
    dec2 = jax.random.normal(k_dec2, (B2, H2), dtype=jnp.float32)
    enc2 = jax.random.normal(k_enc2, (B2, S2, H2), dtype=jnp.float32)
    w2 = jax.random.normal(k_w2, (H2, H2), dtype=jnp.float32) / np.sqrt(H2)

    ctx2, attn2 = attention_forward(dec2, enc2, w2, block_b=8, block_s=128)
    ctx2 = jax.block_until_ready(ctx2)
    attn2 = jax.block_until_ready(attn2)
    ctx2_ref, attn2_ref = attention_reference(dec2, enc2, w2)
    np.testing.assert_allclose(np.asarray(ctx2), np.asarray(ctx2_ref),
                               rtol=2e-5, atol=2e-5)
    np.testing.assert_allclose(np.asarray(attn2), np.asarray(attn2_ref),
                               rtol=2e-5, atol=2e-5)

    print("KERNEL_OK")
</pallas_src>

<mosaic_0001>
module attributes {stable_mosaic.version = 11 : i64} {
  func.func @_attention_kernel(%arg0: i32, %arg1: i32, %arg2: memref<8x32xf32, #tpu.memory_space<vmem>>, %arg3: memref<8x8x32xf32, #tpu.memory_space<vmem>>, %arg4: memref<32x32xf32, #tpu.memory_space<vmem>>, %arg5: memref<8x32xf32, #tpu.memory_space<vmem>>, %arg6: memref<8x8xf32, #tpu.memory_space<vmem>>, %arg7: memref<8x32xf32, #tpu.memory_space<vmem>>, %arg8: memref<8x1xf32, #tpu.memory_space<vmem>>, %arg9: memref<8x1xf32, #tpu.memory_space<vmem>>, %arg10: memref<8x32xf32, #tpu.memory_space<vmem>>, %arg11: memref<1x8x8xf32, #tpu.memory_space<vmem>>) attributes {dimension_semantics = [#tpu.dimension_semantics<parallel>, #tpu.dimension_semantics<arbitrary>], iteration_bounds = array<i64: 1, 1>, scalar_prefetch = 0 : i64, scratch_operands = 5 : i64, tpu.core_type = #tpu.core_type<tc>, window_params = [{transform_indices = @transform_0, window_bounds = array<i64: 8, 32>}, {transform_indices = @transform_1, window_bounds = array<i64: 8, 8, 32>}, {pipeline_mode = #tpu.pipeline_mode<synchronous>, transform_indices = @transform_2, window_bounds = array<i64: 32, 32>}, {transform_indices = @transform_3, window_bounds = array<i64: 8, 32>}, {transform_indices = @transform_4, window_bounds = array<i64: 8, 8>}]} {
    %c0_i32 = arith.constant 0 : i32
    %0 = arith.cmpi eq, %arg1, %c0_i32 : i32
    %1 = arith.extui %0 : i1 to i32
    %c0_i32_0 = arith.constant 0 : i32
    %2 = arith.cmpi ne, %1, %c0_i32_0 : i32
    scf.if %2 {
      %c0_24 = arith.constant 0 : index
      %c0_25 = arith.constant 0 : index
      %41 = vector.load %arg2[%c0_24, %c0_25] : memref<8x32xf32, #tpu.memory_space<vmem>>, vector<8x32xf32>
      %c0_26 = arith.constant 0 : index
      %c0_27 = arith.constant 0 : index
      %42 = vector.load %arg4[%c0_26, %c0_27] : memref<32x32xf32, #tpu.memory_space<vmem>>, vector<32x32xf32>
      %cst_28 = arith.constant dense<0.000000e+00> : vector<8x32xf32>
      %43 = tpu.matmul %41, %42, %cst_28 {dimension_numbers = #tpu.dot_dimension_numbers<[1], [1], [0], [0], [0, 0, 1, 0], [], []>, precision = #tpu.contract_precision<fp32>} : vector<8x32xf32>, vector<32x32xf32>, vector<8x32xf32> -> vector<8x32xf32>
      %c0_29 = arith.constant 0 : index
      %c0_30 = arith.constant 0 : index
      %44 = vector.load %arg7[%c0_29, %c0_30] : memref<8x32xf32, #tpu.memory_space<vmem>>, vector<8x32xf32>
      tpu.vector_store %arg7[%c0_29, %c0_30], %43 {strides = array<i32>} : memref<8x32xf32, #tpu.memory_space<vmem>>, vector<8x32xf32>,
      %cst_31 = arith.constant 0xFF800000 : f32
      %45 = vector.broadcast %cst_31 : f32 to vector<8x1xf32>
      %c0_32 = arith.constant 0 : index
      %c0_33 = arith.constant 0 : index
      %46 = vector.load %arg8[%c0_32, %c0_33] : memref<8x1xf32, #tpu.memory_space<vmem>>, vector<8x1xf32>
      tpu.vector_store %arg8[%c0_32, %c0_33], %45 {strides = array<i32>} : memref<8x1xf32, #tpu.memory_space<vmem>>, vector<8x1xf32>,
      %cst_34 = arith.constant 0.000000e+00 : f32
      %47 = vector.broadcast %cst_34 : f32 to vector<8x1xf32>
      %c0_35 = arith.constant 0 : index
      %c0_36 = arith.constant 0 : index
      %48 = vector.load %arg9[%c0_35, %c0_36] : memref<8x1xf32, #tpu.memory_space<vmem>>, vector<8x1xf32>
      tpu.vector_store %arg9[%c0_35, %c0_36], %47 {strides = array<i32>} : memref<8x1xf32, #tpu.memory_space<vmem>>, vector<8x1xf32>,
      %cst_37 = arith.constant 0.000000e+00 : f32
      %49 = vector.broadcast %cst_37 : f32 to vector<8x32xf32>
      %c0_38 = arith.constant 0 : index
      %c0_39 = arith.constant 0 : index
      %50 = vector.load %arg10[%c0_38, %c0_39] : memref<8x32xf32, #tpu.memory_space<vmem>>, vector<8x32xf32>
      tpu.vector_store %arg10[%c0_38, %c0_39], %49 {strides = array<i32>} : memref<8x32xf32, #tpu.memory_space<vmem>>, vector<8x32xf32>,
    } else {
    }
    %c0 = arith.constant 0 : index
    %c0_1 = arith.constant 0 : index
    %c0_2 = arith.constant 0 : index
    %3 = vector.load %arg3[%c0, %c0_1, %c0_2] : memref<8x8x32xf32, #tpu.memory_space<vmem>>, vector<8x8x32xf32>
    %c0_3 = arith.constant 0 : index
    %c0_4 = arith.constant 0 : index
    %4 = vector.load %arg7[%c0_3, %c0_4] : memref<8x32xf32, #tpu.memory_space<vmem>>, vector<8x32xf32>
    %5 = vector.shape_cast %4 : vector<8x32xf32> to vector<8x1x32xf32>
    %6 = vector.broadcast %5 : vector<8x1x32xf32> to vector<8x8x32xf32>
    %7 = arith.mulf %3, %6 : vector<8x8x32xf32>
    %cst = arith.constant dense<0.000000e+00> : vector<8x8xf32>
    %8 = vector.multi_reduction <add>, %7, %cst [2] : vector<8x8x32xf32> to vector<8x8xf32>
    %9 = arith.index_cast %arg1 : i32 to index
    %c0_5 = arith.constant 0 : index
    %c0_6 = arith.constant 0 : index
    %10 = vector.load %arg11[%9, %c0_5, %c0_6] : memref<1x8x8xf32, #tpu.memory_space<vmem>>, vector<1x8x8xf32>
    %11 = vector.shape_cast %10 : vector<1x8x8xf32> to vector<8x8xf32>
    %12 = vector.shape_cast %8 : vector<8x8xf32> to vector<1x8x8xf32>
    tpu.vector_store %arg11[%9, %c0_5, %c0_6], %12 {strides = array<i32>} : memref<1x8x8xf32, #tpu.memory_space<vmem>>, vector<1x8x8xf32>,
    %c0_7 = arith.constant 0 : index
    %c0_8 = arith.constant 0 : index
    %13 = vector.load %arg8[%c0_7, %c0_8] : memref<8x1xf32, #tpu.memory_space<vmem>>, vector<8x1xf32>
    %cst_9 = arith.constant dense<0xFF800000> : vector<8xf32>
    %14 = vector.multi_reduction <maximumf>, %8, %cst_9 [1] : vector<8x8xf32> to vector<8xf32>
    %15 = vector.shape_cast %14 : vector<8xf32> to vector<8x1xf32>
    %16 = arith.maximumf %13, %15 : vector<8x1xf32>
    %17 = arith.subf %13, %16 : vector<8x1xf32>
    %18 = math.exp %17 : vector<8x1xf32>
    %19 = vector.broadcast %16 : vector<8x1xf32> to vector<8x8xf32>
    %20 = arith.subf %8, %19 : vector<8x8xf32>
    %21 = math.exp %20 : vector<8x8xf32>
    %c0_10 = arith.constant 0 : index
    %c0_11 = arith.constant 0 : index
    %22 = vector.load %arg9[%c0_10, %c0_11] : memref<8x1xf32, #tpu.memory_space<vmem>>, vector<8x1xf32>
    %23 = arith.mulf %18, %22 : vector<8x1xf32>
    %cst_12 = arith.constant dense<0.000000e+00> : vector<8xf32>
    %24 = vector.multi_reduction <add>, %21, %cst_12 [1] : vector<8x8xf32> to vector<8xf32>
    %25 = vector.shape_cast %24 : vector<8xf32> to vector<8x1xf32>
    %26 = arith.addf %23, %25 : vector<8x1xf32>
    %c0_13 = arith.constant 0 : index
    %c0_14 = arith.constant 0 : index
    %27 = vector.load %arg9[%c0_13, %c0_14] : memref<8x1xf32, #tpu.memory_space<vmem>>, vector<8x1xf32>
    tpu.vector_store %arg9[%c0_13, %c0_14], %26 {strides = array<i32>} : memref<8x1xf32, #tpu.memory_space<vmem>>, vector<8x1xf32>,
    %c0_15 = arith.constant 0 : index
    %c0_16 = arith.constant 0 : index
    %28 = vector.load %arg10[%c0_15, %c0_16] : memref<8x32xf32, #tpu.memory_space<vmem>>, vector<8x32xf32>
    %29 = vector.broadcast %18 : vector<8x1xf32> to vector<8x32xf32>
    %30 = arith.mulf %29, %28 : vector<8x32xf32>
    %31 = vector.shape_cast %21 : vector<8x8xf32> to vector<8x8x1xf32>
    %32 = vector.broadcast %31 : vector<8x8x1xf32> to vector<8x8x32xf32>
    %33 = arith.mulf %32, %3 : vector<8x8x32xf32>
    %cst_17 = arith.constant dense<0.000000e+00> : vector<8x32xf32>
    %34 = vector.multi_reduction <add>, %33, %cst_17 [1] : vector<8x8x32xf32> to vector<8x32xf32>
    %35 = arith.addf %30, %34 : vector<8x32xf32>
    %c0_18 = arith.constant 0 : index
    %c0_19 = arith.constant 0 : index
    %36 = vector.load %arg10[%c0_18, %c0_19] : memref<8x32xf32, #tpu.memory_space<vmem>>, vector<8x32xf32>
    tpu.vector_store %arg10[%c0_18, %c0_19], %35 {strides = array<i32>} : memref<8x32xf32, #tpu.memory_space<vmem>>, vector<8x32xf32>,
    %c0_20 = arith.constant 0 : index
    %c0_21 = arith.constant 0 : index
    %37 = vector.load %arg8[%c0_20, %c0_21] : memref<8x1xf32, #tpu.memory_space<vmem>>, vector<8x1xf32>
    tpu.vector_store %arg8[%c0_20, %c0_21], %16 {strides = array<i32>} : memref<8x1xf32, #tpu.memory_space<vmem>>, vector<8x1xf32>,
    %c0_i32_22 = arith.constant 0 : i32
    %38 = arith.cmpi eq, %arg1, %c0_i32_22 : i32
    %39 = arith.extui %38 : i1 to i32
    %c0_i32_23 = arith.constant 0 : i32
    %40 = arith.cmpi ne, %39, %c0_i32_23 : i32
    scf.if %40 {
      %c0_24 = arith.constant 0 : index
      %c0_25 = arith.constant 0 : index
      %41 = vector.load %arg9[%c0_24, %c0_25] : memref<8x1xf32, #tpu.memory_space<vmem>>, vector<8x1xf32>
      %42 = tpu.reciprocal %41 : vector<8x1xf32> -> vector<8x1xf32>
      %c0_26 = arith.constant 0 : index
      %c0_27 = arith.constant 0 : index
      %43 = vector.load %arg10[%c0_26, %c0_27] : memref<8x32xf32, #tpu.memory_space<vmem>>, vector<8x32xf32>
      %44 = vector.broadcast %42 : vector<8x1xf32> to vector<8x32xf32>
      %45 = arith.mulf %43, %44 : vector<8x32xf32>
      %c0_28 = arith.constant 0 : index
      %c0_29 = arith.constant 0 : index
      %46 = vector.load %arg5[%c0_28, %c0_29] : memref<8x32xf32, #tpu.memory_space<vmem>>, vector<8x32xf32>
      tpu.vector_store %arg5[%c0_28, %c0_29], %45 {strides = array<i32>} : memref<8x32xf32, #tpu.memory_space<vmem>>, vector<8x32xf32>,
      %c0_30 = arith.constant 0 : index
      %c0_31 = arith.constant 0 : index
      %47 = vector.load %arg8[%c0_30, %c0_31] : memref<8x1xf32, #tpu.memory_space<vmem>>, vector<8x1xf32>
      %c0_32 = arith.constant 0 : index
      %c0_33 = arith.constant 0 : index
      %c0_34 = arith.constant 0 : index
      %48 = vector.load %arg11[%c0_32, %c0_33, %c0_34] : memref<1x8x8xf32, #tpu.memory_space<vmem>>, vector<1x8x8xf32>
      %49 = vector.shape_cast %48 : vector<1x8x8xf32> to vector<8x8xf32>
      %50 = vector.broadcast %47 : vector<8x1xf32> to vector<8x8xf32>
      %51 = arith.subf %49, %50 : vector<8x8xf32>
      %52 = math.exp %51 : vector<8x8xf32>
      %53 = vector.broadcast %42 : vector<8x1xf32> to vector<8x8xf32>
      %54 = arith.mulf %52, %53 : vector<8x8xf32>
      %c0_35 = arith.constant 0 : index
      %c0_36 = arith.constant 0 : index
      %55 = vector.load %arg6[%c0_35, %c0_36] : memref<8x8xf32, #tpu.memory_space<vmem>>, vector<8x8xf32>
      tpu.vector_store %arg6[%c0_35, %c0_36], %54 {strides = array<i32>} : memref<8x8xf32, #tpu.memory_space<vmem>>, vector<8x8xf32>,
    } else {
    }
    return
  }
  func.func @transform_0(%arg0: i32, %arg1: i32) -> (i32, i32) {
    %c0_i32 = arith.constant 0 : i32
    %c0_i32_0 = arith.constant 0 : i32
    return %arg0, %c0_i32 : i32, i32
  }
  func.func @transform_1(%arg0: i32, %arg1: i32) -> (i32, i32, i32) {
    %c0_i32 = arith.constant 0 : i32
    %c0_i32_0 = arith.constant 0 : i32
    return %arg0, %arg1, %c0_i32 : i32, i32, i32
  }
  func.func @transform_2(%arg0: i32, %arg1: i32) -> (i32, i32) {
    %c0_i32 = arith.constant 0 : i32
    %c0_i32_0 = arith.constant 0 : i32
    %c0_i32_1 = arith.constant 0 : i32
    return %c0_i32, %c0_i32_0 : i32, i32
  }
  func.func @transform_3(%arg0: i32, %arg1: i32) -> (i32, i32) {
    %c0_i32 = arith.constant 0 : i32
    %c0_i32_0 = arith.constant 0 : i32
    return %arg0, %c0_i32 : i32, i32
  }
  func.func @transform_4(%arg0: i32, %arg1: i32) -> (i32, i32) {
    %c0_i32 = arith.constant 0 : i32
    %c0_i32_0 = arith.constant 0 : i32
    return %arg0, %c0_i32 : i32, i32
  }
}

</mosaic_0001>

<bundles_post_ra>
// kernel: tpu_custom_call.1
= control target key start
LH: loop header
LB: loop body
LE: loop exit
PB: predicated region body
PF: predicated region fallthrough
CT: control target
= control target key end

     0   :  { %10 = vsyncpa [#allocation8], 0  ;;  %s1646_s0 = inlined_call_operand.hbm [shape: f32[8,32], index: 0, kind: input, shape index: {}]   ;;  %s1647_s1 = inlined_call_operand.hbm [shape: f32[8,8,32], index: 1, kind: input, shape index: {}]   ;;  %s1648_s2 = inlined_call_operand.hbm [shape: f32[32,32], index: 2, kind: input, shape index: {}]   ;;  %s1649_s3 = inlined_call_operand.hbm [shape: f32[8,32], index: 3, kind: output, shape index: {0}]   ;;  %s1650_s4 = inlined_call_operand.hbm [shape: f32[8,8], index: 4, kind: output, shape index: {1}]  }
   0x1   :  { %11 = vsyncpa [#allocation11], 0 }
   0x2   :  { %12 = vsyncpa [#allocation9], 0 }
   0x3   :  { %13 = vsyncpa [#allocation15], 0  ;;  %s1371_s15 = smov [#allocation10]   ;;  %s1253_s19 = scalar_lea.hbm %s1647_s1, 1024 }
   0x4   :  { %s29_s16 = sshll.u32 %s1371_s15, 4  ;;  %p1254_p0 = scmp.ne.s32.totalorder %s1647_s1, %s1253_s19  ;;  %s30_s16 = int_to_ptr.vmem [resolvable:$true] %s29_s16 }
   0x5   :  { %p1257_p1 = scmp.lt.u32.totalorder %s1253_s19, %s1647_s1 }
   0x7   :  { %p1259_p2 = pnand %p1257_p1, %p1254_p0 }
   0x9   :  { %1262 = shalt.err (!%p1259_p2)
}
   0xa   :  { %s1263_s24 = scalar_lea.vmem %s30_s16, 1024  ;;  %p1268_p4 = scmp.lt.s32.totalorder %s30_s16, %s30_s16 }
   0xb   :  { %p1264_p3 = scmp.ne.s32.totalorder %s30_s16, %s1263_s24  ;;  %p1269_p5 = scmp.lt.s32.totalorder %s1263_s24, %s1263_s24 }
   0xd   :  { %p1270_p6 = por %p1269_p5, %p1268_p4 }
   0xf   :  { %p1271_p7 = pnand %p1270_p6, %p1264_p3 }
  0x11   :  { %1274 = shalt.err (!%p1271_p7)
}
  0x12   :  { %s1372_s25 = smov 128   ;;  %s1373_s26 = smov 8  }
  0x13   :  { %35 = dma.hbm_to_vmem [thread:$0]  %s1647_s1, 1024, %s30_s16, [#allocation11], %s1372_s25, %s1372_s25, %s1373_s26  }
  0x14   :  { %s1374_s29 = smov [#allocation7]   ;;  %s1375_s5 = smov [#allocation12]  }
  0x15   :  { %s20_s30 = sshll.u32 %s1374_s29, 4  ;;  %s41_s6 = sshll.u32 %s1375_s5, 4  ;;  %s21_s30 = int_to_ptr.vmem [resolvable:$true] %s20_s30  ;;  %s42_s6 = int_to_ptr.vmem [resolvable:$true] %s41_s6 }
  0x16   :  { %s1275_s9 = scalar_lea.hbm %s1646_s0, 128 }
  0x17   :  { %p1276_p8 = scmp.ne.s32.totalorder %s1646_s0, %s1275_s9  ;;  %p1279_p9 = scmp.lt.u32.totalorder %s1275_s9, %s1646_s0 }
  0x19   :  { %p1281_p10 = pnand %p1279_p9, %p1276_p8 }
  0x1b   :  { %1284 = shalt.err (!%p1281_p10)
}
  0x1c   :  { %s1285_s1 = scalar_lea.vmem %s21_s30, 128  ;;  %p1290_p12 = scmp.lt.s32.totalorder %s21_s30, %s21_s30 }
  0x1d   :  { %p1286_p11 = scmp.ne.s32.totalorder %s21_s30, %s1285_s1  ;;  %p1291_p13 = scmp.lt.s32.totalorder %s1285_s1, %s1285_s1 }
  0x1f   :  { %p1292_p0 = por %p1291_p13, %p1290_p12 }
  0x21   :  { %p1293_p1 = pnand %p1292_p0, %p1286_p11 }
  0x23   :  { %1296 = shalt.err (!%p1293_p1)
}
  0x24   :  { %23 = dma.hbm_to_vmem [thread:$0]  %s1646_s0, 128, %s21_s30, [#allocation8]  }
  0x25   :  { %s1297_s18 = scalar_lea.hbm %s1648_s2, 512 }
  0x26   :  { %p1298_p2 = scmp.ne.s32.totalorder %s1648_s2, %s1297_s18  ;;  %p1301_p3 = scmp.lt.u32.totalorder %s1297_s18, %s1648_s2 }
  0x28   :  { %p1303_p4 = pnand %p1301_p3, %p1298_p2 }
  0x2a   :  { %1306 = shalt.err (!%p1303_p4)
}
  0x2b   :  { %s1307_s23 = scalar_lea.vmem %s42_s6, 512  ;;  %p1312_p6 = scmp.lt.s32.totalorder %s42_s6, %s42_s6 }
  0x2c   :  { %p1308_p5 = scmp.ne.s32.totalorder %s42_s6, %s1307_s23  ;;  %p1313_p7 = scmp.lt.s32.totalorder %s1307_s23, %s1307_s23 }
  0x2e   :  { %p1314_p8 = por %p1313_p7, %p1312_p6 }
  0x30   :  { %p1315_p9 = pnand %p1314_p8, %p1308_p5 }
  0x32   :  { %1318 = shalt.err (!%p1315_p9)
}
  0x33   :  { %47 = dma.hbm_to_vmem [thread:$0]  %s1648_s2, 512, %s42_s6, [#allocation11], %s1372_s25, %s1372_s25, %s1373_s26  }
  0x34   :  { %1363 = dma.done.wait [#allocation8], 128  }
  0x35   :  { %1364 = vsyncadd [#allocation8], 4294967168 }
  0x36   :  { %1365 = dma.done.wait [#allocation11], 1536  }
  0x37   :  { %1366 = vsyncadd [#allocation11], 4294965760  ;;  %vm66_vm0 = vcmask 261120   ;;  %v1376_v0 = vmov 0.0|0.0   ;;  %v1377_v1 = vmov 0.0   ;;  %vm1378_vm1 = vmmov 0  }
  0x38   :  { %1170 = vmatprep.subr.bf16.mxu1 %v1376_v0  ;;  %1188 = vmatprep.subr.bf16.mxu0 %v1376_v0  ;;  %571 = vst.msk [vmem:[#allocation5] sm:$0xff] %vm66_vm0, %v1377_v1  ;;  %v62_v2 = vld [vmem:[#allocation12] sm:$0xff]  ;;  %v63_v3 = vld [vmem:[#allocation12 + $0x8] sm:$0xff]  ;;  %v64_v4 = vld [vmem:[#allocation12 + $0x10] sm:$0xff]  ;;  %v1379_v45 = vmov 1966171168   ;;  %v586_v47 = vlaneseq }
  0x39   :  { %1112 = vmatprep.mubr.msk.f32.mxu1 %vm1378_vm1, %v1377_v1  ;;  %1145 = vmatprep.mubr.msk.f32.mxu0 %vm1378_vm1, %v1377_v1  ;;  %v71_v5 = vsel %vm66_vm0, %v62_v2, 0  ;;  %v74_v6 = vsel %vm66_vm0, %v63_v3, 0  ;;  %v65_v7 = vld [vmem:[#allocation12 + $0x18] sm:$0xff]  ;;  %v77_v11 = vsel %vm66_vm0, %v64_v4, 0  ;;  %v584_v46 = vunpack.c.l.s4 %v1379_v45  ;;  %v1490_v63 = vld [vmem:[#allocation10] sm:$0xff]  ;;  %s1382_s2 = smov [#allocation13]  }
  0x3a   :  { %v61_v8 = vld [vmem:[#allocation7] sm:$0xff]  ;;  %v83_v9 = vand.u32 4294901760, %v71_v5  ;;  %v86_v10 = vand.u32 4294901760, %v74_v6  ;;  %v80_v12 = vsel %vm66_vm0, %v65_v7, 0  ;;  %v89_v18 = vand.u32 4294901760, %v77_v11  ;;  %s1050_s25 = sshll.u32 %s1382_s2, 4  ;;  %s1051_s25 = int_to_ptr.vmem [resolvable:$true] %s1050_s25 }
  0x3b   :  { %v68_v13 = vsel %vm66_vm0, %v61_v8, 0  ;;  %v92_v19 = vand.u32 4294901760, %v80_v12  ;;  %v585_v53 = vunpack.c.0.s8 %v584_v46  ;;  %v1484_v54 = vshrl.u32 %v586_v47, 7  ;;  %s1383_s26 = smov [#allocation14]   ;;  %s1319_s28 = scalar_lea.vmem %s1051_s25, 128 }
  0x3c   :  { %v1171_v14 = vpack.c.bf16 %v86_v10, %v83_v9  ;;  %v163_v15 = vsub.f32 %v71_v5, %v83_v9  ;;  %v170_v16 = vsub.f32 %v74_v6, %v86_v10  ;;  %v151_v17 = vand.u32 4294901760, %v68_v13  ;;  %v1493_v5 = vld [vmem:[#allocation10 + $0x10] sm:$0xff]  ;;  %v1495_v6 = vld [vmem:[#allocation10 + $0x8] sm:$0xff]  ;;  %s1060_s27 = sshll.u32 %s1383_s26, 4  ;;  %p1320_p10 = scmp.ne.s32.totalorder %s1051_s25, %s1319_s28  ;;  %s1061_s27 = int_to_ptr.vmem [resolvable:$true] %s1060_s27 }
  0x3d   :  { %v177_v23 = vsub.f32 %v77_v11, %v89_v18  ;;  %v1174_v25 = vpack.c.bf16 %v92_v19, %v89_v18  ;;  %v184_v26 = vsub.f32 %v80_v12, %v92_v19  ;;  %v588_v55 = vsub.s32 %v585_v53, %v1484_v54  ;;  %v1500_v12 = vld [vmem:[#allocation10 + $0x18] sm:$0xff]  ;;  %p1324_p11 = scmp.lt.s32.totalorder %s1051_s25, %s1051_s25  ;;  %p1325_p12 = scmp.lt.s32.totalorder %s1319_s28, %s1319_s28 }
  0x3e   :  { %1172 = vmatpush3.bf16.xpose.msra.mxu1 %v1171_v14  ;;  %1190 = vmatpush3.bf16.xpose.msra.mxu0 %v1171_v14  ;;  %v164_v20 = vand.u32 4294901760, %v163_v15  ;;  %v171_v21 = vand.u32 4294901760, %v170_v16  ;;  %v152_v22 = vsub.f32 %v68_v13, %v151_v17  ;;  %v1183_v43 = vpack.c.bf16 %v170_v16, %v163_v15 }
  0x3f   :  { %1173 = vmatprep.subr.bf16.mxu1 %v1376_v0  ;;  %1191 = vmatprep.subr.bf16.mxu0 %v1376_v0  ;;  %v178_v32 = vand.u32 4294901760, %v177_v23  ;;  %v185_v33 = vand.u32 4294901760, %v184_v26  ;;  %v1186_v44 = vpack.c.bf16 %v184_v26, %v177_v23  ;;  %v1488_v58 = vsub.s32 0, %v1484_v54  ;;  %p1326_p13 = por %p1325_p12, %p1324_p11 }
  0x40   :  { %v153_v24 = vand.u32 4294901760, %v152_v22  ;;  %v165_v27 = vsub.f32 %v163_v15, %v164_v20  ;;  %v172_v28 = vsub.f32 %v170_v16, %v171_v21  ;;  %v1195_v36 = vpack.c.bf16 %v171_v21, %v164_v20  ;;  %v1507_v20 = vld [vmem:[#allocation10 + $0x20] sm:$0xff] }
  0x41   :  { %v179_v37 = vsub.f32 %v177_v23, %v178_v32  ;;  %v186_v38 = vsub.f32 %v184_v26, %v185_v33  ;;  %v1198_v42 = vpack.c.bf16 %v185_v33, %v178_v32  ;;  %v1522_v33 = vld [vmem:[#allocation10 + $0x38] sm:$0xff]  ;;  %vm568_vm2 = vcmask 7168   ;;  %p1327_p0 = pnand %p1326_p13, %p1320_p10 }
  0x42   :  { %v154_v29 = vsub.f32 %v152_v22, %v153_v24  ;;  %v166_v30 = vand.u32 4294901760, %v165_v27  ;;  %v173_v31 = vand.u32 4294901760, %v172_v28  ;;  %570 = vst.msk [vmem:[#allocation4] sm:$0xff] %vm568_vm2, %v1377_v1  ;;  %vm746_vm3 = vcmask 1041409  }
  0x43   :  { %v180_v39 = vand.u32 4294901760, %v179_v37  ;;  %v187_v40 = vand.u32 4294901760, %v186_v38  ;;  %vm748_vm4 = vcmask 1042434   ;;  %vm750_vm5 = vcmask 1043459  }
  0x44   :  { %v155_v34 = vand.u32 4294901760, %v154_v29  ;;  %v1177_v35 = vpack.c.bf16 %v173_v31, %v166_v30  ;;  %v1517_v29 = vld [vmem:[#allocation10 + $0x30] sm:$0xff]  ;;  %vm752_vm6 = vcmask 1044484   ;;  %vm754_vm7 = vcmask 1045509  }
  0x45   :  { %v1180_v41 = vpack.c.bf16 %v187_v40, %v180_v39  ;;  %v1380_v40 = vmov -inf   ;;  %vm756_vm8 = vcmask 1046534   ;;  %vm758_vm9 = vcmask 1047559  }
  0x46   :  { %1175 = vmatpush3.bf16.xpose.msra.mxu1 %v1174_v25  ;;  %1193 = vmatpush3.bf16.xpose.msra.mxu0 %v1174_v25  ;;  %569 = vst.msk [vmem:[#allocation3] sm:$0xff] %vm568_vm2, %v1380_v40  ;;  %vm763_vm10 = vcmask 64512   ;;  %v807_v40 = vsub.s32 7, %v1484_v54 }
  0x47   :  { %1176 = vmatprep.subr.bf16.mxu1 %v1376_v0  ;;  %1194 = vmatprep.subr.bf16.mxu0 %v1376_v0 }
  0x4d   :  { %1113 = vmatmul.mubr.f32.vlgmr.msra.gmra.mrb[0].mxu1 %v155_v34  ;;  %1146 = vmatmul.mubr.f32.vlgmr.msra.gmra.mrb[0].mxu0 %v153_v24 }
  0x4e   :  { %1178 = vmatpush3.bf16.xpose.msra.mxu1 %v1177_v35  ;;  %1196 = vmatpush3.bf16.xpose.msra.mxu0 %v1195_v36 }
  0x4f   :  { %1179 = vmatprep.subr.bf16.mxu1 %v1376_v0  ;;  %1197 = vmatprep.subr.bf16.mxu0 %v1376_v0 }
  0x50   :  { %1123 = vmatprep.mubr.msk.f32.mxu1 %vm1378_vm1, %v1377_v1  ;;  %1156 = vmatprep.mubr.msk.f32.mxu0 %vm1378_vm1, %v1377_v1 }
  0x56   :  { %1181 = vmatpush3.bf16.xpose.msra.mxu1 %v1180_v41  ;;  %1199 = vmatpush3.bf16.xpose.msra.mxu0 %v1198_v42  ;;  %v713_v41 = vand.u32 127, %v586_v47 }
  0x57   :  { %1182 = vmatprep.subr.bf16.mxu1 %v1376_v0  ;;  %1200 = vmatprep.subr.bf16.mxu0 %v1376_v0 }
  0x5d   :  { %1124 = vmatmul.mubr.f32.vlgmr.msra.gmra.mrb[0].mxu1 %v151_v17  ;;  %1157 = vmatmul.mubr.f32.vlgmr.msra.gmra.mrb[0].mxu0 %v151_v17 }
  0x5e   :  { %1184 = vmatpush3.bf16.xpose.msra.mxu1 %v1183_v43  ;;  %1202 = vmatpush3.bf16.xpose.msra.mxu0 %v1171_v14  ;;  %v1535_v43 = vsub.s32 %v713_v41, %v1484_v54 }
  0x5f   :  { %1185 = vmatprep.subr.bf16.mxu1 %v1376_v0  ;;  %1203 = vmatprep.subr.bf16.mxu0 %v1376_v0 }
  0x60   :  { %1134 = vmatprep.mubr.msk.f32.mxu1 %vm1378_vm1, %v1377_v1  ;;  %1167 = vmatprep.mubr.msk.f32.mxu0 %vm1378_vm1, %v1377_v1 }
  0x66   :  { %1187 = vmatpush3.bf16.xpose.msra.mxu1 %v1186_v44  ;;  %1205 = vmatpush3.bf16.xpose.msra.mxu0 %v1174_v25  ;;  %v1512_v25 = vld [vmem:[#allocation10 + $0x28] sm:$0xff] }
  0x6d   :  { %1135 = vmatmul.mubr.f32.vlgmr.msra.gmra.mrb[0].mxu1 %v152_v22  ;;  %1168 = vmatmul.mubr.f32.vlgmr.msra.gmra.mrb[0].mxu0 %v151_v17 }
 0x140   :  { %v328_v48 = vpop.f32.mrb[0].mxu1  ;;  %v563_v49 = vpop.f32.mrb[0].mxu0 }
 0x141   :  { %v1206_v50 = vadd.f32 %v563_v49, %v328_v48  ;;  %v1136_v51 = vpop.f32.mrb[1].mxu1  ;;  %v1169_v52 = vpop.f32.mrb[1].mxu0 }
 0x143   :  { %567 = vst.msk [vmem:[#allocation2] sm:$0xff] %vm66_vm0, %v1206_v50 }
 0x14a   :  { %v580_v56 = vld [vmem:[#allocation2] sm:$0xff] }
 0x14b   :  { %v589_v57 = vrot.slane %v580_v56, %v588_v55  ;;  %v582_v59 = vcombine.high %v580_v56, %v580_v56 }
 0x14d   :  { %v605_v60 = vrot.slane %v589_v57, %v588_v55  ;;  %v597_v61 = vcombine.high %v589_v57, %v589_v57  ;;  %v596_v62 = vrot.slane %v582_v59, %v588_v55 }
 0x14f   :  { %v634_v0 = vrot.slane %v605_v60, %v1488_v58  ;;  %v627_v2 = vcombine.high %v605_v60, %v605_v60  ;;  %v619_v3 = vrot.slane %v597_v61, %v588_v55  ;;  %v612_v4 = vrot.slane %v596_v62, %v588_v55 }
 0x150   :  { %v598_v7 = vcombine.high %v596_v62, %v596_v62 }
 0x151   :  { %v671_v8 = vmul.f32 %v634_v0, %v1490_v63  ;;  %v642_v9 = vrot.slane %v627_v2, %v1488_v58  ;;  %v638_v10 = vrot.slane %v619_v3, %v1488_v58  ;;  %v629_v11 = vcombine.high %v619_v3, %v619_v3 }
 0x152   :  { %v650_v13 = vrot.slane %v612_v4, %v1488_v58  ;;  %v626_v14 = vrot.slane %v598_v7, %v588_v55  ;;  %v628_v15 = vcombine.high %v612_v4, %v612_v4 }
 0x153   :  { %v680_v16 = vsel %vm66_vm0, %v671_v8, 0.0  ;;  %v673_v17 = vmul.f32 %v642_v9, %v1493_v5  ;;  %v672_v18 = vmul.f32 %v638_v10, %v1495_v6  ;;  %v646_v19 = vrot.slane %v629_v11, %v1488_v58  ;;  %v765_v9 = vld [vmem:[#allocation3] sm:$0xff] }
 0x154   :  { %681 = vadd.xlane.f32.xlu0 %v680_v16  ;;  %v654_v23 = vrot.slane %v626_v14, %v1488_v58  ;;  %v630_v24 = vcombine.high %v626_v14, %v626_v14  ;;  %v675_v27 = vmul.f32 %v650_v13, %v1507_v20  ;;  %v658_v28 = vrot.slane %v628_v15, %v1488_v58 }
 0x155   :  { %v686_v21 = vsel %vm66_vm0, %v673_v17, 0.0  ;;  %v674_v22 = vmul.f32 %v646_v19, %v1500_v12  ;;  %v683_v26 = vsel %vm66_vm0, %v672_v18, 0.0  ;;  %v1381_v8 = vmov 0  }
 0x156   :  { %687 = vadd.xlane.f32.xlu1 %v686_v21  ;;  %v676_v31 = vmul.f32 %v654_v23, %v1512_v25  ;;  %v662_v32 = vrot.slane %v630_v24, %v1488_v58  ;;  %v692_v34 = vsel %vm66_vm0, %v675_v27, 0.0  ;;  %v677_v35 = vmul.f32 %v658_v28, %v1517_v29  ;;  %1229 = vset.pattern.permute.xlu0 %v1381_v8 }
 0x157   :  { %v689_v30 = vsel %vm66_vm0, %v674_v22, 0.0  ;;  %1228 = vset.pattern.permute.xlu1 %v1381_v8  ;;  %v783_v14 = vsub.s32 1, %v1484_v54  ;;  %v787_v15 = vsub.s32 2, %v1484_v54  ;;  %v791_v16 = vsub.s32 3, %v1484_v54 }
 0x158   :  { %684 = vadd.xlane.f32.xlu0 %v683_v26  ;;  %v695_v36 = vsel %vm66_vm0, %v676_v31, 0.0  ;;  %v678_v37 = vmul.f32 %v662_v32, %v1522_v33  ;;  %v698_v38 = vsel %vm66_vm0, %v677_v35, 0.0  ;;  %v795_v24 = vsub.s32 4, %v1484_v54 }
 0x159   :  { %v799_v31 = vsub.s32 5, %v1484_v54 }
 0x15a   :  { %690 = vadd.xlane.f32.xlu1 %v689_v30  ;;  %v701_v39 = vsel %vm66_vm0, %v678_v37, 0.0 }
 0x15c   :  { %693 = vadd.xlane.f32.xlu0 %v692_v34 }
 0x15e   :  { %696 = vadd.xlane.f32.xlu1 %v695_v36 }
 0x160   :  { %699 = vadd.xlane.f32.xlu0 %v698_v38 }
 0x162   :  { %702 = vadd.xlane.f32.xlu1 %v701_v39 }
 0x1e1   :  { %v682_v42 = vpop.xlane.xlu0 %681 }
 0x1e2   :  { %v717_v46 = vrot.slane %v682_v42, %v1535_v43 }
 0x1e3   :  { %v688_v44 = vpop.xlane.xlu1 %687 }
 0x1e4   :  { %v725_v49 = vrot.slane %v688_v44, %v1535_v43 }
 0x1e5   :  { %v685_v45 = vpop.xlane.xlu0 %684 }
 0x1e6   :  { %v721_v48 = vrot.slane %v685_v45, %v1535_v43 }
 0x1e7   :  { %v691_v50 = vpop.xlane.xlu1 %690 }
 0x1e8   :  { %v747_v1 = vsel %vm746_vm3, %v721_v48, %v717_v46  ;;  %v729_v47 = vrot.slane %v691_v50, %v1535_v43 }
 0x1e9   :  { %v749_v51 = vsel %vm748_vm4, %v725_v49, %v747_v1  ;;  %v694_v52 = vpop.xlane.xlu0 %693 }
 0x1ea   :  { %v751_v53 = vsel %vm750_vm5, %v729_v47, %v749_v51  ;;  %v733_v55 = vrot.slane %v694_v52, %v1535_v43 }
 0x1eb   :  { %v1545_v56 = vpop.xlane.xlu1 %696 }
 0x1ec   :  { %v753_v57 = vsel %vm752_vm6, %v733_v55, %v751_v53  ;;  %v737_v59 = vrot.slane %v1545_v56, %v1535_v43 }
 0x1ed   :  { %v1550_v60 = vpop.xlane.xlu0 %699 }
 0x1ee   :  { %v741_v61 = vrot.slane %v1550_v60, %v1535_v43  ;;  %v755_v62 = vsel %vm754_vm7, %v737_v59, %v753_v57 }
 0x1ef   :  { %v1555_v0 = vpop.xlane.xlu1 %702 }
 0x1f0   :  { %v745_v2 = vrot.slane %v1555_v0, %v1535_v43  ;;  %v757_v3 = vsel %vm756_vm8, %v741_v61, %v755_v62 }
 0x1f2   :  { %v759_v4 = vsel %vm758_vm9, %v745_v2, %v757_v3 }
 0x1f3   :  { %v766_v7 = vsel %vm763_vm10, %v759_v4, -inf  ;;  %764 = vst.msk [vmem:[#allocation6] sm:$0xff] %vm763_vm10, %v759_v4 }
 0x1f4   :  { %767 = vmax.xlane.f32.xlu0 %v766_v7 }
 0x281   :  { %v768_v10 = vpop.xlane.xlu0 %767 }
 0x282   :  { %v769_v11 = vmax.f32 %v765_v9, %v768_v10 }
 0x284   :  { %v770_v13 = vsub.f32 %v765_v9, %v769_v11  ;;  %1018 = vst.msk [vmem:[#allocation3] sm:$0xff] %vm568_vm2, %v769_v11  ;;  %775 = vperm.xlu1 %1228, %v769_v11  }
 0x286   :  { %v771_v36 = vmul.f32 1.442695, %v770_v13 }
 0x28b   :  { %v1032_v1 = vld [vmem:[#allocation3] sm:$0xff] }
 0x303   :  { %v776_v17 = vpop.permute.xlu1 %775 }
 0x304   :  { %v780_v18 = vrot.slane %v776_v17, %v1488_v58  ;;  %v784_v19 = vrot.slane %v776_v17, %v783_v14  ;;  %v788_v21 = vrot.slane %v776_v17, %v787_v15  ;;  %v792_v26 = vrot.slane %v776_v17, %v791_v16 }
 0x305   :  { %v796_v32 = vrot.slane %v776_v17, %v795_v24  ;;  %v803_v58 = vsub.s32 6, %v1484_v54  ;;  %v800_v37 = vrot.slane %v776_v17, %v799_v31  ;;  %v808_v48 = vrot.slane %v776_v17, %v807_v40 }
 0x306   :  { %v817_v22 = vsub.f32 %v682_v42, %v780_v18  ;;  %v818_v23 = vsub.f32 %v685_v45, %v784_v19  ;;  %v819_v27 = vsub.f32 %v688_v44, %v788_v21  ;;  %v820_v34 = vsub.f32 %v691_v50, %v792_v26 }
 0x307   :  { %v821_v38 = vsub.f32 %v694_v52, %v796_v32  ;;  %v804_v41 = vrot.slane %v776_v17, %v803_v58  ;;  %v822_v42 = vsub.f32 %v1545_v56, %v800_v37  ;;  %v824_v54 = vsub.f32 %v1555_v0, %v808_v48 }
 0x308   :  { %v825_v28 = vmul.f32 1.442695, %v817_v22  ;;  %v827_v30 = vmul.f32 1.442695, %v818_v23  ;;  %v829_v35 = vmul.f32 1.442695, %v819_v27 }
 0x309   :  { %v831_v39 = vmul.f32 1.442695, %v820_v34  ;;  %v833_v44 = vmul.f32 1.442695, %v821_v38  ;;  %v823_v49 = vsub.f32 %v1550_v60, %v804_v41  ;;  %v835_v50 = vmul.f32 1.442695, %v822_v42 }
 0x30a   :  { %1231 = vpow2.f32 %v825_v28  ;;  %v839_v55 = vmul.f32 1.442695, %v824_v54 }
 0x30b   :  { %1233 = vpow2.f32 %v827_v30  ;;  %v837_v51 = vmul.f32 1.442695, %v823_v49 }
 0x30c   :  { %1235 = vpow2.f32 %v829_v35 }
 0x30d   :  { %1237 = vpow2.f32 %v771_v36 }
 0x30e   :  { %1239 = vpow2.f32 %v831_v39 }
 0x30f   :  { %1241 = vpow2.f32 %v833_v44 }
 0x310   :  { %1243 = vpow2.f32 %v835_v50 }
 0x311   :  { %1245 = vpow2.f32 %v837_v51 }
 0x312   :  { %1247 = vpow2.f32 %v839_v55 }
 0x314   :  { %v1232_v45 = vpop.eup %1231 }
 0x315   :  { %v1234_v46 = vpop.eup %1233  ;;  %852 = vperm.xlu0 %1229, %v1232_v45  }
 0x316   :  { %855 = vperm.xlu1 %1228, %v1234_v46   ;;  %v1236_v47 = vpop.eup %1235 }
 0x317   :  { %v1575_v52 = vpop.eup %1237 }
 0x318   :  { %v1240_v53 = vpop.eup %1239 }
 0x319   :  { %1036 = vperm.xlu0 %1229, %v1032_v1   ;;  %v1242_v56 = vpop.eup %1241 }
 0x31a   :  { %858 = vperm.xlu1 %1228, %v1236_v47   ;;  %v1244_v57 = vpop.eup %1243 }
 0x31b   :  { %v1246_v59 = vpop.eup %1245 }
 0x31c   :  { %v1248_v60 = vpop.eup %1247 }
 0x31d   :  { %924 = vperm.xlu0 %1229, %v1575_v52  }
 0x31e   :  { %861 = vperm.xlu1 %1228, %v1240_v53  }
 0x322   :  { %864 = vperm.xlu1 %1228, %v1242_v56  }
 0x326   :  { %867 = vperm.xlu1 %1228, %v1244_v57  }
 0x32a   :  { %870 = vperm.xlu1 %1228, %v1246_v59  }
 0x32e   :  { %873 = vperm.xlu1 %1228, %v1248_v60  }
 0x394   :  { %v853_v61 = vpop.permute.xlu0 %852 }
 0x395   :  { %v856_v62 = vpop.permute.xlu1 %855  ;;  %v936_v0 = vmul.f32 %v853_v61, %v1490_v63 }
 0x396   :  { %v937_v2 = vmul.f32 %v856_v62, %v1495_v6  ;;  %v882_v27 = vrot.slane %v856_v62, %v1535_v43 }
 0x397   :  { %v944_v3 = vsel %vm66_vm0, %v936_v0, 0.0 }
 0x398   :  { %v951_v8 = vsel %vm66_vm0, %v937_v2, 0.0  ;;  %v945_v9 = vrot.slane %v944_v3, 4 }
 0x399   :  { %v859_v4 = vpop.permute.xlu1 %858  ;;  %v952_v14 = vrot.slane %v951_v8, 4 }
 0x39a   :  { %v938_v7 = vmul.f32 %v859_v4, %v1493_v5  ;;  %v946_v15 = vadd.f32 %v945_v9, %v944_v3  ;;  %v886_v31 = vrot.slane %v859_v4, %v1535_v43 }
 0x39b   :  { %v953_v19 = vadd.f32 %v952_v14, %v951_v8  ;;  %v1037_v14 = vpop.permute.xlu0 %1036 }
 0x39c   :  { %v958_v10 = vsel %vm66_vm0, %v938_v7, 0.0  ;;  %v947_v21 = vrot.slane %v946_v15, 2 }
 0x39d   :  { %v862_v11 = vpop.permute.xlu1 %861  ;;  %v959_v16 = vrot.slane %v958_v10, 4  ;;  %v954_v30 = vrot.slane %v953_v19, 2 }
 0x39e   :  { %v939_v13 = vmul.f32 %v862_v11, %v1500_v12  ;;  %v878_v12 = vrot.slane %v853_v61, %v1535_v43  ;;  %v948_v34 = vadd.f32 %v947_v21, %v946_v15  ;;  %v890_v35 = vrot.slane %v862_v11, %v1535_v43 }
 0x39f   :  { %v960_v5 = vadd.f32 %v959_v16, %v958_v10  ;;  %v955_v44 = vadd.f32 %v954_v30, %v953_v19 }
 0x3a0   :  { %v965_v63 = vsel %vm66_vm0, %v939_v13, 0.0  ;;  %v907_v40 = vsel %vm746_vm3, %v882_v27, %v878_v12  ;;  %v949_v49 = vrot.slane %v948_v34, 1  ;;  %v921_v12 = vld [vmem:[#allocation5] sm:$0xff] }
 0x3a1   :  { %v966_v17 = vrot.slane %v965_v63, 4  ;;  %v865_v6 = vpop.permute.xlu1 %864  ;;  %v908_v45 = vsel %vm748_vm4, %v886_v31, %v907_v40  ;;  %v956_v61 = vrot.slane %v955_v44, 1 }
 0x3a2   :  { %v940_v18 = vmul.f32 %v865_v6, %v1507_v20  ;;  %v961_v20 = vrot.slane %v960_v5, 2  ;;  %v894_v37 = vrot.slane %v865_v6, %v1535_v43  ;;  %v909_v1 = vsel %vm750_vm5, %v890_v35, %v908_v45 }
 0x3a3   :  { %v967_v23 = vadd.f32 %v966_v17, %v965_v63  ;;  %v950_v11 = vadd.f32 %v949_v49, %v948_v34 }
 0x3a4   :  { %v972_v22 = vsel %vm66_vm0, %v940_v18, 0.0  ;;  %v962_v50 = vadd.f32 %v961_v20, %v960_v5  ;;  %v910_v51 = vsel %vm752_vm6, %v894_v37, %v909_v1  ;;  %v841_v37 = vld [vmem:[#allocation4] sm:$0xff] }
 0x3a5   :  { %v973_v24 = vrot.slane %v972_v22, 4  ;;  %v868_v26 = vpop.permute.xlu1 %867  ;;  %v968_v58 = vrot.slane %v967_v23, 2 }
 0x3a6   :  { %v941_v28 = vmul.f32 %v868_v26, %v1512_v25  ;;  %v898_v25 = vrot.slane %v868_v26, %v1535_v43  ;;  %v963_v3 = vrot.slane %v962_v50, 1 }
 0x3a7   :  { %v974_v32 = vadd.f32 %v973_v24, %v972_v22  ;;  %v969_v54 = vadd.f32 %v968_v58, %v967_v23 }
 0x3a8   :  { %v979_v36 = vsel %vm66_vm0, %v941_v28, 0.0  ;;  %v911_v60 = vsel %vm754_vm7, %v898_v25, %v910_v51  ;;  %v964_v17 = vadd.f32 %v963_v3, %v962_v50  ;;  %v925_v28 = vpop.permute.xlu0 %924 }
 0x3a9   :  { %v980_v38 = vrot.slane %v979_v36, 4  ;;  %v871_v39 = vpop.permute.xlu1 %870  ;;  %v975_v41 = vrot.slane %v974_v32, 2  ;;  %v970_v8 = vrot.slane %v969_v54, 1  ;;  %v927_v20 = vmul.f32 %v925_v28, %v921_v12 }
 0x3aa   :  { %v942_v42 = vmul.f32 %v871_v39, %v1517_v29  ;;  %v902_v48 = vrot.slane %v871_v39, %v1535_v43 }
 0x3ab   :  { %v981_v46 = vadd.f32 %v980_v38, %v979_v36  ;;  %v976_v57 = vadd.f32 %v975_v41, %v974_v32  ;;  %v971_v6 = vadd.f32 %v970_v8, %v969_v54  ;;  %v842_v38 = vmul.f32 %v1575_v52, %v841_v37 }
 0x3ac   :  { %v986_v47 = vsel %vm66_vm0, %v942_v42, 0.0  ;;  %v912_v2 = vsel %vm756_vm8, %v902_v48, %v911_v60  ;;  %v1033_v42 = vld [vmem:[#allocation6] sm:$0xff] }
 0x3ad   :  { %v982_v53 = vrot.slane %v981_v46, 2  ;;  %v987_v55 = vrot.slane %v986_v47, 4  ;;  %v874_v56 = vpop.permute.xlu1 %873  ;;  %v977_v13 = vrot.slane %v976_v57, 1 }
 0x3ae   :  { %v906_v29 = vrot.slane %v874_v56, %v1535_v43  ;;  %v943_v59 = vmul.f32 %v874_v56, %v1522_v33  ;;  %v957_v33 = vadd.f32 %v956_v61, %v955_v44  ;;  %v1039_v44 = vsub.f32 %v1033_v42, %v1037_v14 }
 0x3af   :  { %v983_v62 = vadd.f32 %v982_v53, %v981_v46  ;;  %v988_v0 = vadd.f32 %v987_v55, %v986_v47  ;;  %v978_v21 = vadd.f32 %v977_v13, %v976_v57 }
 0x3b0   :  { %v993_v4 = vsel %vm66_vm0, %v943_v59, 0.0  ;;  %v913_v7 = vsel %vm758_vm9, %v906_v29, %v912_v2  ;;  %v1008_v5 = vsel %vm746_vm3, %v957_v33, %v950_v11  ;;  %v1040_v45 = vmul.f32 1.442695, %v1039_v44 }
 0x3b1   :  { %v989_v9 = vrot.slane %v988_v0, 2  ;;  %v994_v10 = vrot.slane %v993_v4, 4  ;;  %v915_v43 = vsel %vm763_vm10, %v913_v7, 0.0  ;;  %v984_v15 = vrot.slane %v983_v62, 1 }
 0x3b2   :  { %916 = vadd.xlane.f32.xlu1 %v915_v43  ;;  %v1009_v24 = vsel %vm748_vm4, %v964_v17, %v1008_v5 }
 0x3b3   :  { %v990_v16 = vadd.f32 %v989_v9, %v988_v0  ;;  %v995_v63 = vadd.f32 %v994_v10, %v993_v4  ;;  %v985_v22 = vadd.f32 %v984_v15, %v983_v62  ;;  %v1010_v27 = vsel %vm750_vm5, %v971_v6, %v1009_v24 }
 0x3b4   :  { %v1011_v31 = vsel %vm752_vm6, %v978_v21, %v1010_v27 }
 0x3b5   :  { %v991_v18 = vrot.slane %v990_v16, 1  ;;  %v996_v19 = vrot.slane %v995_v63, 2  ;;  %v1012_v32 = vsel %vm754_vm7, %v985_v22, %v1011_v31 }
 0x3b7   :  { %v997_v23 = vadd.f32 %v996_v19, %v995_v63  ;;  %v992_v26 = vadd.f32 %v991_v18, %v990_v16 }
 0x3b9   :  { %v998_v30 = vrot.slane %v997_v23, 1  ;;  %v1013_v35 = vsel %vm756_vm8, %v992_v26, %v1012_v32 }
 0x3bb   :  { %v999_v34 = vadd.f32 %v998_v30, %v997_v23 }
 0x3bd   :  { %v1014_v36 = vsel %vm758_vm9, %v999_v34, %v1013_v35 }
 0x3be   :  { %v1016_v58 = vadd.f32 %v1014_v36, %v927_v20 }
 0x3c0   :  { %1017 = vst.msk [vmem:[#allocation5] sm:$0xff] %vm66_vm0, %v1016_v58 }
 0x3c7   :  { %v1024_v48 = vld [vmem:[#allocation5] sm:$0xff] }
 0x43f   :  { %v917_v39 = vpop.xlane.xlu1 %916 }
 0x440   :  { %v918_v40 = vadd.f32 %v917_v39, %v842_v38 }
 0x442   :  { %920 = vst.msk [vmem:[#allocation4] sm:$0xff] %vm568_vm2, %v918_v40 }
 0x449   :  { %v1022_v41 = vld [vmem:[#allocation4] sm:$0xff] }
 0x44a   :  { %1249 = vrcp.f32 %v1022_v41 }
 0x44b   :  { %1251 = vpow2.f32 %v1040_v45 }
 0x454   :  { %v1250_v25 = vpop.eup %1249 }
 0x455   :  { %1027 = vperm.xlu0 %1229, %v1250_v25   ;;  %v1252_v46 = vpop.eup %1251 }
 0x4d4   :  { %v1028_v49 = vpop.permute.xlu0 %1027 }
 0x4d5   :  { %v1030_v52 = vmul.f32 %v1028_v49, %v1024_v48  ;;  %v1042_v50 = vmul.f32 %v1252_v46, %v1028_v49 }
 0x4d7   :  { %1031 = vst.msk [vmem:[#allocation13] sm:$0xff] %vm66_vm0, %v1030_v52 }
 0x4d8   :  { %1043 = vst.msk [vmem:[#allocation14] sm:$0xff] %vm763_vm10, %v1042_v50 }
 0x4d9   :  { %1330 = shalt.err (!%p1327_p0)
}
 0x4da   :  { %s1331_s5 = scalar_lea.hbm %s1649_s3, 128 }
 0x4db   :  { %p1332_p1 = scmp.ne.s32.totalorder %s1649_s3, %s1331_s5  ;;  %p1335_p2 = scmp.lt.u32.totalorder %s1331_s5, %s1649_s3 }
 0x4dd   :  { %p1337_p3 = pnand %p1335_p2, %p1332_p1 }
 0x4df   :  { %1340 = shalt.err (!%p1337_p3)
}
 0x4e0   :  { %1053 = dma.vmem_to_hbm [thread:$0]  %s1051_s25, 128, %s1649_s3, [#allocation9]  }
 0x4e1   :  { %s1341_s12 = scalar_lea.vmem %s1061_s27, 128  ;;  %p1346_p5 = scmp.lt.s32.totalorder %s1061_s27, %s1061_s27 }
 0x4e2   :  { %p1342_p4 = scmp.ne.s32.totalorder %s1061_s27, %s1341_s12  ;;  %p1347_p6 = scmp.lt.s32.totalorder %s1341_s12, %s1341_s12 }
 0x4e4   :  { %p1348_p7 = por %p1347_p6, %p1346_p5 }
 0x4e6   :  { %p1349_p8 = pnand %p1348_p7, %p1342_p4 }
 0x4e8   :  { %1352 = shalt.err (!%p1349_p8)
}
 0x4e9   :  { %s1353_s14 = scalar_lea.hbm %s1650_s4, 128 }
 0x4ea   :  { %p1354_p9 = scmp.ne.s32.totalorder %s1650_s4, %s1353_s14  ;;  %p1357_p10 = scmp.lt.u32.totalorder %s1353_s14, %s1650_s4 }
 0x4ec   :  { %p1359_p11 = pnand %p1357_p10, %p1354_p9 }
 0x4ee   :  { %1362 = shalt.err (!%p1359_p11)
}
 0x4ef   :  { %1063 = dma.vmem_to_hbm [thread:$0]  %s1061_s27, 128, %s1650_s4, [#allocation15]  }
 0x4f0   :  { %1367 = dma.done.wait [#allocation9], 128  }
 0x4f1   :  { %1368 = vsyncadd [#allocation9], 4294967168 }
 0x4f2   :  { %1369 = dma.done.wait [#allocation15], 128  }
 0x4f3   :  { %1370 = vsyncadd [#allocation15], 4294967168 }
 0x4f4   :  { %1070 = vsyncpa [#allocation8], 1 }
 0x4f5   :  { %1071 = vsyncpa [#allocation11], 1 }
 0x4f6   :  { %1072 = vsyncpa [#allocation9], 1 }
 0x4f7   :  { %1073 = vsyncpa [#allocation15], 1 }

</bundles_post_ra>
